<compile_context>
chip_gen: v5e
topology: v5e:2x2
jax: 0.10.0
libtpu: 0.0.40
codegen_flags: <defaults>
</compile_context>

<pallas_src>
import jax
import jax.numpy as jnp
from jax.experimental import pallas as pl
from jax.experimental.pallas import tpu as pltpu


LANES = 128
# Prefer the widest lane-dense last dim that evenly divides the element count.
_CANDIDATE_WIDTHS = (4096, 2048, 1024, 512, 256, 128)
_TARGET_BLOCK_BYTES = 4 * 1024 * 1024     # ~4 MiB blocks, double-buffered
_MIN_PALLAS_BYTES = 1 * 1024 * 1024       # below this: fuse in XLA
_VMEM_LIMIT_BYTES = 40 * 1024 * 1024      # 16 MiB live + headroom; < v7x 64 MiB


def _trelu_kernel(alpha_ref, x_ref, o_ref):
    # alpha_ref: SMEM scalar (shape (1,), f32); x_ref/o_ref: VMEM tiles.
    a = alpha_ref[0].astype(x_ref.dtype)          # native-dtype compute
    o_ref[...] = jnp.maximum(x_ref[...], a)


def _fused_trelu(x, alpha):
    # Plain XLA path: fusable into the producing op's epilogue.
    return jnp.maximum(x, alpha.astype(x.dtype)[0])


def trelu(x: jax.Array, alpha: jax.Array, *,
          min_pallas_bytes: int = _MIN_PALLAS_BYTES,
          donate_x: bool = False) -> jax.Array:
    """y = relu(x - alpha) + alpha == max(x, alpha), elementwise, any shape.

    x: any shape / float dtype. alpha: shape (1,) learnable scalar (f32).
    donate_x: alias x's buffer into the output (only if the caller does not
    need x afterwards).
    """
    orig_shape = x.shape
    n = x.size
    itemsize = jnp.dtype(x.dtype).itemsize

    # Small activation maps: a standalone Pallas launch costs a full HBM
    # read+write plus dispatch overhead; let XLA fuse instead.
    if n * itemsize < min_pallas_bytes:
        return _fused_trelu(x, alpha)

    # Lane-dense 2-D fold: widest width that evenly divides n.
    width = next((w for w in _CANDIDATE_WIDTHS if n % w == 0), None)
    if width is None:
        # TODO(synk): ragged sizes could use a masked tail store
        # (pltpu.store(..., mask=...)) instead of falling back to XLA.
        return _fused_trelu(x, alpha)
    rows = n // width
    x2d = x.reshape(rows, width)                  # contiguous reshape: free

    # Dtype-aware sublane granularity: (8,128) f32, (16,128) bf16, (32,128) i8.
    sub = max(8, 32 // itemsize)
    block_rows = max(sub, (_TARGET_BLOCK_BYTES // (width * itemsize)) // sub * sub)
    # Keep >= 2 grid steps so the "parallel" axis can shard across both
    # TensorCores of a v7x megacore (grid=(1,) would leave one TC idle).
    if rows >= 2 * sub:
        half = -(-((rows + 1) // 2) // sub) * sub
        block_rows = min(block_rows, half)
    if block_rows >= rows:
        block_rows = rows                         # full-extent block (legal)
    grid = (pl.cdiv(rows, block_rows),)

    out2d = pl.pallas_call(
        _trelu_kernel,
        out_shape=jax.ShapeDtypeStruct((rows, width), x.dtype),
        grid=grid,
        in_specs=[
            pl.BlockSpec(memory_space=pltpu.MemorySpace.SMEM),    # alpha scalar
            pl.BlockSpec((block_rows, width), lambda i: (i, 0)),  # x tile
        ],
        out_specs=pl.BlockSpec((block_rows, width), lambda i: (i, 0)),
        compiler_params=pltpu.CompilerParams(
            dimension_semantics=("parallel",),
            vmem_limit_bytes=_VMEM_LIMIT_BYTES,
        ),
        cost_estimate=pl.CostEstimate(
            flops=n, transcendentals=0, bytes_accessed=2 * n * itemsize),
        input_output_aliases=({1: 0} if donate_x else {}),
    )(alpha.astype(jnp.float32), x2d)

    return out2d.reshape(orig_shape)


def trelu_reference(x, alpha):
    return jnp.maximum(x - alpha[0], 0.0) + alpha[0]


if __name__ == "__main__":
    key = jax.random.PRNGKey(0)
    # Small NCHW-style input, consistent with a critic conv feature map.
    x = jax.random.normal(key, (2, 4, 16, 16), dtype=jnp.float32)
    alpha = jnp.zeros((1,), dtype=jnp.float32)    # PyTorch init: alpha = 0

    # Force the Pallas path even though this tensor is tiny (the default
    # dispatcher would hand it to XLA for fusion).
    y = jax.block_until_ready(trelu(x, alpha, min_pallas_bytes=0))
    assert y.shape == x.shape and y.dtype == x.dtype
    assert jnp.allclose(y, trelu_reference(x, alpha), atol=1e-6)

    # Nonzero alpha: threshold behaviour.
    alpha2 = jnp.array([0.3], dtype=jnp.float32)
    y2 = jax.block_until_ready(trelu(x, alpha2, min_pallas_bytes=0))
    assert jnp.allclose(y2, trelu_reference(x, alpha2), atol=1e-6)

    # Default dispatch: small tensor takes the fused XLA path; ragged sizes too.
    y3 = jax.block_until_ready(trelu(x, alpha2))
    assert jnp.allclose(y3, y2, atol=1e-6)
    x_odd = jax.random.normal(key, (2, 3, 5, 7), dtype=jnp.float32)
    y4 = jax.block_until_ready(trelu(x_odd, alpha2))
    assert jnp.allclose(y4, trelu_reference(x_odd, alpha2), atol=1e-6)

    # Larger f32 tensor: exercises the multi-step parallel grid (grid=(4,)).
    xb = jax.random.normal(key, (1024, 4096), dtype=jnp.float32)
    yb = jax.block_until_ready(trelu(xb, alpha2))
    assert jnp.allclose(yb, trelu_reference(xb, alpha2), atol=1e-6)

    # bf16 tensor: exercises native-dtype compute and 16-row sublane rounding.
    xh = jax.random.normal(key, (512, 2048), dtype=jnp.bfloat16)
    alpha3 = jnp.array([0.25], dtype=jnp.float32)   # exactly representable in bf16
    yh = jax.block_until_ready(trelu(xh, alpha3))
    assert yh.dtype == jnp.bfloat16
    assert jnp.allclose(yh.astype(jnp.float32),
                        jnp.maximum(xh.astype(jnp.float32), 0.25), atol=1e-3)

    print("KERNEL_OK")
</pallas_src>

<mosaic_0001>
module attributes {stable_mosaic.version = 11 : i64} {
  func.func @_trelu_kernel(%arg0: i32, %arg1: memref<1xf32, #tpu.memory_space<smem>>, %arg2: memref<1x2048xf32, #tpu.memory_space<vmem>>, %arg3: memref<1x2048xf32, #tpu.memory_space<vmem>>) attributes {dimension_semantics = [#tpu.dimension_semantics<parallel>], iteration_bounds = array<i64: 1>, scalar_prefetch = 0 : i64, scratch_operands = 0 : i64, tpu.core_type = #tpu.core_type<tc>, window_params = [{transform_indices = @transform_0, window_bounds = array<i64: 1>}, {transform_indices = @transform_1, window_bounds = array<i64: 1, 2048>}, {transform_indices = @transform_2, window_bounds = array<i64: 1, 2048>}]} {
    %c0 = arith.constant 0 : index
    %0 = memref.load %arg1[%c0] : memref<1xf32, #tpu.memory_space<smem>>
    %c0_0 = arith.constant 0 : index
    %c0_1 = arith.constant 0 : index
    %1 = vector.load %arg2[%c0_0, %c0_1] : memref<1x2048xf32, #tpu.memory_space<vmem>>, vector<1x2048xf32>
    %2 = vector.broadcast %0 : f32 to vector<1x2048xf32>
    %3 = arith.maximumf %1, %2 : vector<1x2048xf32>
    %c0_2 = arith.constant 0 : index
    %c0_3 = arith.constant 0 : index
    %4 = vector.load %arg3[%c0_2, %c0_3] : memref<1x2048xf32, #tpu.memory_space<vmem>>, vector<1x2048xf32>
    tpu.vector_store %arg3[%c0_2, %c0_3], %3 {strides = array<i32>} : memref<1x2048xf32, #tpu.memory_space<vmem>>, vector<1x2048xf32>,
    return
  }
  func.func @transform_0(%arg0: i32) -> i32 {
    %c0_i32 = arith.constant 0 : i32
    %c0_i32_0 = arith.constant 0 : i32
    return %c0_i32 : i32
  }
  func.func @transform_1(%arg0: i32) -> (i32, i32) {
    %c0_i32 = arith.constant 0 : i32
    %c0_i32_0 = arith.constant 0 : i32
    return %arg0, %c0_i32 : i32, i32
  }
  func.func @transform_2(%arg0: i32) -> (i32, i32) {
    %c0_i32 = arith.constant 0 : i32
    %c0_i32_0 = arith.constant 0 : i32
    return %arg0, %c0_i32 : i32, i32
  }
}

</mosaic_0001>

<bundles_post_ra>
// kernel: tpu_custom_call.1
= control target key start
LH: loop header
LB: loop body
LE: loop exit
PB: predicated region body
PF: predicated region fallthrough
CT: control target
= control target key end

     0   :  { %8 = vsyncpa [#allocation4], 0  ;;  %s132_s0 = inlined_call_operand.<no memory space> [shape: f32[1], index: 0, kind: input, shape index: {}]   ;;  %s133_s1 = inlined_call_operand.hbm [shape: f32[1,2048], index: 1, kind: input, shape index: {}]   ;;  %s134_s2 = inlined_call_operand.hbm [shape: f32[1,2048], index: 2, kind: output, shape index: {}]  }
   0x1   :  { %9 = vsyncpa [#allocation5], 0  ;;  %s17_s11 = sshll.u32 %s133_s1, 4  ;;  %s106_s12 = smov [#allocation3]   ;;  %s18_s11 = int_to_ptr.hbm [resolvable:$true] %s17_s11 }
   0x2   :  { %s19_s13 = sshll.u32 %s106_s12, 4  ;;  %s20_s13 = int_to_ptr.vmem [resolvable:$true] %s19_s13 }
   0x3   :  { %22 = dma.hbm_to_vmem [thread:$0]  %s18_s11, 256, %s20_s13, [#allocation4]  }
   0x4   :  { %102 = dma.done.wait [#allocation4], 256  }
   0x5   :  { %103 = vsyncadd [#allocation4], 4294967040  ;;  %v30_v0 = vstv %s132_s0  ;;  %s107_s16 = smov [#allocation6]   ;;  %s42_s20 = sshll.u32 %s134_s2, 4  ;;  %v28_v1 = vld [vmem:[#allocation3] sm:$0xff]  ;;  %v29_v2 = vld [vmem:[#allocation3 + $0x8] sm:$0xff]  ;;  %s43_s20 = int_to_ptr.hbm [resolvable:$true] %s42_s20 }
   0x6   :  { %s40_s17 = sshll.u32 %s107_s16, 4  ;;  %v31_v3 = vmax.f32 %v28_v1, %v30_v0  ;;  %v32_v4 = vmax.f32 %v29_v2, %v30_v0  ;;  %s41_s17 = int_to_ptr.vmem [resolvable:$true] %s40_s17 }
   0x8   :  { %33 = vst [vmem:[#allocation6] sm:$0xff] %v31_v3 }
   0x9   :  { %34 = vst [vmem:[#allocation6 + $0x8] sm:$0xff] %v32_v4 }
   0xa   :  { %45 = dma.vmem_to_hbm [thread:$0]  %s41_s17, 256, %s43_s20, [#allocation5]  }
   0xb   :  { %104 = dma.done.wait [#allocation5], 256  }
   0xc   :  { %105 = vsyncadd [#allocation5], 4294967040 }
   0xd   :  { %50 = vsyncpa [#allocation4], 1 }
   0xe   :  { %51 = vsyncpa [#allocation5], 1 }

</bundles_post_ra>
